<compile_context>
chip_gen: v7x
topology: tpu7x:2x2x1
jax: 0.10.0
libtpu: 0.0.40
codegen_flags: <defaults>
</compile_context>

<pallas_src>
import functools
import math

import jax
import jax.numpy as jnp
from jax.experimental import pallas as pl
from jax.experimental.pallas import tpu as pltpu


# ----------------------------- tiling helpers -------------------------------
def _vmem_bytes():
    try:
        return int(pltpu.get_tpu_info().vmem_capacity_bytes)
    except Exception:
        return 64 * 1024 * 1024  # conservative (v7x-class) default


_BIG_VMEM = _vmem_bytes() >= 100 * 1024 * 1024   # v5e / v6e: 128 MiB; v7x: 64 MiB

# GEMM / attention tile preferences (bf16 operands, f32 accumulation).
_TM_PREF = 256
_TN_PREF = 512 if _BIG_VMEM else 256
_TK_PREF = 1024 if _BIG_VMEM else 512
_TQ_PREF = 256
_TKV_PREF = 512 if _BIG_VMEM else 256


def _pick_tile(dim, pref, granule):
    """Largest tile <= pref that is a multiple of `granule` and divides `dim`,
    falling back to the full dim (always legal w.r.t. the (8,128) rule)."""
    if dim <= pref:
        return dim
    t = (pref // granule) * granule
    while t >= granule:
        if dim % t == 0:
            return t
        t -= granule
    return dim


# ------------------ fused RMSNorm + projection kernels ----------------------
def _norm_matmul_kernel(x_ref, wln_ref, w_ref, o_ref, *, eps):
    x = x_ref[...]                                              # (tm, D) f32
    var = jnp.mean(x * x, axis=-1, keepdims=True)
    xn = (x * jax.lax.rsqrt(var + eps) * wln_ref[...]).astype(jnp.bfloat16)
    o_ref[...] = jnp.dot(xn, w_ref[...],
                         preferred_element_type=jnp.float32).astype(o_ref.dtype)


def norm_matmul(x, ln_w, w_bf16, eps):
    """out = rmsnorm(x) @ W, out dtype bf16.  x:(N,D) f32, W:(D,Dn) bf16."""
    N, D = x.shape
    Dn = w_bf16.shape[1]
    tm = _pick_tile(N, _TM_PREF, 8)
    tn = _pick_tile(Dn, _TN_PREF, 128)
    return pl.pallas_call(
        functools.partial(_norm_matmul_kernel, eps=eps),
        out_shape=jax.ShapeDtypeStruct((N, Dn), jnp.bfloat16),
        grid=(N // tm, Dn // tn),
        in_specs=[pl.BlockSpec((tm, D), lambda i, j: (i, 0)),
                  pl.BlockSpec((1, D), lambda i, j: (0, 0)),
                  pl.BlockSpec((D, tn), lambda i, j: (0, j))],
        out_specs=pl.BlockSpec((tm, tn), lambda i, j: (i, j)),
        compiler_params=pltpu.CompilerParams(
            dimension_semantics=("parallel", "parallel")),
    )(x, ln_w.reshape(1, D), w_bf16)


def _norm_glu_kernel(x_ref, wln_ref, wg_ref, wu_ref, o_ref, *, eps):
    x = x_ref[...]                                              # (tm, D) f32
    var = jnp.mean(x * x, axis=-1, keepdims=True)
    xn = (x * jax.lax.rsqrt(var + eps) * wln_ref[...]).astype(jnp.bfloat16)
    g = jnp.dot(xn, wg_ref[...], preferred_element_type=jnp.float32)
    u = jnp.dot(xn, wu_ref[...], preferred_element_type=jnp.float32)
    o_ref[...] = (g * jax.nn.sigmoid(g) * u).astype(o_ref.dtype)   # SiLU gate


def norm_gate_up(x, ln_w, wg_bf16, wu_bf16, eps):
    """out = silu(rmsnorm(x) @ Wg) * (rmsnorm(x) @ Wu), bf16."""
    N, D = x.shape
    I = wg_bf16.shape[1]
    tm = _pick_tile(N, _TM_PREF, 8)
    tn = _pick_tile(I, _TN_PREF, 128)
    return pl.pallas_call(
        functools.partial(_norm_glu_kernel, eps=eps),
        out_shape=jax.ShapeDtypeStruct((N, I), jnp.bfloat16),
        grid=(N // tm, I // tn),
        in_specs=[pl.BlockSpec((tm, D), lambda i, j: (i, 0)),
                  pl.BlockSpec((1, D), lambda i, j: (0, 0)),
                  pl.BlockSpec((D, tn), lambda i, j: (0, j)),
                  pl.BlockSpec((D, tn), lambda i, j: (0, j))],
        out_specs=pl.BlockSpec((tm, tn), lambda i, j: (i, j)),
        compiler_params=pltpu.CompilerParams(
            dimension_semantics=("parallel", "parallel")),
    )(x, ln_w.reshape(1, D), wg_bf16, wu_bf16)


# -------------- K-tiled matmul with fused residual add ----------------------
def _matmul_res_kernel(a_ref, w_ref, r_ref, o_ref, acc_ref):
    @pl.when(pl.program_id(2) == 0)
    def _():
        acc_ref[...] = jnp.zeros_like(acc_ref)

    acc_ref[...] += jnp.dot(a_ref[...], w_ref[...],
                            preferred_element_type=jnp.float32)

    @pl.when(pl.program_id(2) == pl.num_programs(2) - 1)
    def _():
        o_ref[...] = r_ref[...] + acc_ref[...]


def matmul_residual(a_bf16, w_bf16, residual_f32):
    """out = residual + a @ W with f32 accumulation; K-tiled."""
    N, K = a_bf16.shape
    _, Dn = w_bf16.shape
    tm = _pick_tile(N, _TM_PREF, 8)
    tn = _pick_tile(Dn, _TN_PREF, 128)
    tk = _pick_tile(K, _TK_PREF, 128)
    return pl.pallas_call(
        _matmul_res_kernel,
        out_shape=jax.ShapeDtypeStruct((N, Dn), jnp.float32),
        grid=(N // tm, Dn // tn, K // tk),
        in_specs=[pl.BlockSpec((tm, tk), lambda i, j, k: (i, k)),
                  pl.BlockSpec((tk, tn), lambda i, j, k: (k, j)),
                  pl.BlockSpec((tm, tn), lambda i, j, k: (i, j))],
        out_specs=pl.BlockSpec((tm, tn), lambda i, j, k: (i, j)),
        scratch_shapes=[pltpu.VMEM((tm, tn), jnp.float32)],
        compiler_params=pltpu.CompilerParams(
            dimension_semantics=("parallel", "parallel", "arbitrary")),
    )(a_bf16, w_bf16, residual_f32)


# ------------- flash attention (rotary + causal + GQA via index_map) --------
def _flash_kernel(q_ref, k_ref, v_ref, cq_ref, sq_ref, ck_ref, sk_ref,
                  o_ref, m_sc, l_sc, acc_sc, *, scale):
    qi = pl.program_id(2)
    ki = pl.program_id(3)
    tq = q_ref.shape[2]
    tkv = k_ref.shape[2]
    hd = q_ref.shape[3]
    half = hd // 2

    @pl.when(ki == 0)
    def _():
        m_sc[...] = jnp.full_like(m_sc, -1e30)
        l_sc[...] = jnp.zeros_like(l_sc)
        acc_sc[...] = jnp.zeros_like(acc_sc)

    kv_start = ki * tkv
    q_last = qi * tq + tq - 1

    # Skip KV blocks that are entirely above the causal diagonal.
    @pl.when(kv_start <= q_last)
    def _():
        def rope(x, cos_full, sin_signed):
            # non-interleaved (GPT-NeoX) rotary: x*cos + rotate_half(x)*sin
            rot = jnp.concatenate([x[:, half:], x[:, :half]], axis=-1)
            return x * cos_full + rot * sin_signed

        q = q_ref[0, 0].astype(jnp.float32)                 # (tq, hd)
        k = k_ref[0, 0].astype(jnp.float32)                 # (tkv, hd)
        qr = rope(q, cq_ref[...], sq_ref[...]).astype(jnp.bfloat16)
        kr = rope(k, ck_ref[...], sk_ref[...]).astype(jnp.bfloat16)

        s = jax.lax.dot_general(qr, kr, (((1,), (1,)), ((), ())),
                                preferred_element_type=jnp.float32) * scale
        row = qi * tq + jax.lax.broadcasted_iota(jnp.int32, (tq, tkv), 0)
        col = kv_start + jax.lax.broadcasted_iota(jnp.int32, (tq, tkv), 1)
        s = jnp.where(col <= row, s, jnp.float32(-1e30))    # causal mask

        m_prev = m_sc[...]
        m_new = jnp.maximum(m_prev, jnp.max(s, axis=-1, keepdims=True))
        alpha = jnp.exp(m_prev - m_new)
        p = jnp.exp(s - m_new)
        l_sc[...] = alpha * l_sc[...] + jnp.sum(p, axis=-1, keepdims=True)
        acc_sc[...] = alpha * acc_sc[...] + jnp.dot(
            p.astype(jnp.bfloat16), v_ref[0, 0],
            preferred_element_type=jnp.float32)
        m_sc[...] = m_new

    @pl.when(ki == pl.num_programs(3) - 1)
    def _():
        inv_l = pl.reciprocal(l_sc[...], approx=True)       # EUP slot
        o_ref[0, 0] = (acc_sc[...] * inv_l).astype(o_ref.dtype)


def flash_attention(q, k, v, cos_full, sin_signed, scale, rep):
    # q: (B, H, S, hd) bf16; k/v: (B, Hkv, S, hd) bf16 (KV heads NOT repeated).
    B, H, S, hd = q.shape
    tq = _pick_tile(S, _TQ_PREF, 128 if S >= 128 else 8)
    tkv = _pick_tile(S, _TKV_PREF, 128 if S >= 128 else 8)

    q_spec = pl.BlockSpec((1, 1, tq, hd), lambda b, h, qi, ki: (b, h, qi, 0))
    kv_spec = pl.BlockSpec((1, 1, tkv, hd),
                           lambda b, h, qi, ki: (b, h // rep, ki, 0))  # GQA reuse
    cq_spec = pl.BlockSpec((tq, hd), lambda b, h, qi, ki: (qi, 0))
    ck_spec = pl.BlockSpec((tkv, hd), lambda b, h, qi, ki: (ki, 0))
    out_spec = pl.BlockSpec((1, 1, tq, hd), lambda b, h, qi, ki: (b, h, qi, 0))

    return pl.pallas_call(
        functools.partial(_flash_kernel, scale=scale),
        out_shape=jax.ShapeDtypeStruct((B, H, S, hd), jnp.bfloat16),
        grid=(B, H, S // tq, S // tkv),
        in_specs=[q_spec, kv_spec, kv_spec, cq_spec, cq_spec, ck_spec, ck_spec],
        out_specs=out_spec,
        scratch_shapes=[pltpu.VMEM((tq, 1), jnp.float32),
                        pltpu.VMEM((tq, 1), jnp.float32),
                        pltpu.VMEM((tq, hd), jnp.float32)],
        compiler_params=pltpu.CompilerParams(
            dimension_semantics=("parallel", "parallel", "parallel", "arbitrary")),
    )(q, k, v, cos_full, sin_signed, cos_full, sin_signed)


# --------------------------- full decoder layer ------------------------------
def mha_decoder_layer(hidden_states, params, cfg):
    """Reproduces MHADecoderLayer.forward(hidden_states) with
    inference_params=None, cu_seqlens=None."""
    B, S, D = hidden_states.shape
    H = cfg["num_attention_heads"]
    Hkv = cfg["num_key_value_heads"]
    hd = D // H
    rep = H // Hkv
    eps = cfg["rms_norm_eps"]
    N = B * S

    x2 = hidden_states.reshape(N, D).astype(jnp.float32)

    # Weights cast to bf16 once (MXU operands); accumulation stays f32.
    wqkv = params["wqkv"].astype(jnp.bfloat16)
    wo = params["wo"].astype(jnp.bfloat16)
    wg = params["wg"].astype(jnp.bfloat16)
    wu = params["wu"].astype(jnp.bfloat16)
    wd = params["wd"].astype(jnp.bfloat16)

    # --- attention block: fused RMSNorm + QKV projection -------------------
    qkv = norm_matmul(x2, params["input_ln_w"], wqkv, eps)      # (N, (H+2Hkv)*hd) bf16
    qkv = qkv.reshape(B, S, (H + 2 * Hkv) * hd)
    q = qkv[..., : H * hd].reshape(B, S, H, hd).transpose(0, 2, 1, 3)         # (B,H,S,hd)
    k = qkv[..., H * hd:(H + Hkv) * hd].reshape(B, S, Hkv, hd).transpose(0, 2, 1, 3)
    v = qkv[..., (H + Hkv) * hd:].reshape(B, S, Hkv, hd).transpose(0, 2, 1, 3)

    # Rotary tables: full-width (S, hd) cos and signed-sin so the kernel does
    # x*cos + rotate_half(x)*sin with lane-dense operands.
    half = hd // 2
    inv_freq = 1.0 / (cfg["rope_theta"]
                      ** (jnp.arange(0, half, dtype=jnp.float32) * 2.0 / hd))
    freqs = jnp.outer(jnp.arange(S, dtype=jnp.float32), inv_freq)    # (S, half)
    cos_full = jnp.concatenate([jnp.cos(freqs), jnp.cos(freqs)], axis=-1)     # (S, hd)
    sin_signed = jnp.concatenate([-jnp.sin(freqs), jnp.sin(freqs)], axis=-1)  # (S, hd)

    attn = flash_attention(q, k, v, cos_full, sin_signed,
                           scale=1.0 / math.sqrt(hd), rep=rep)      # (B,H,S,hd) bf16
    attn2 = attn.transpose(0, 2, 1, 3).reshape(N, D)                # (N, D) bf16

    # out-projection with fused residual add (residual = pre-norm input)
    x_attn = matmul_residual(attn2, wo, x2)                         # (N, D) f32

    # --- MLP block: fused RMSNorm + gate/up + SiLU, then down-proj + residual
    h_glu = norm_gate_up(x_attn, params["post_ln_w"], wg, wu, eps)  # (N, I) bf16
    out = matmul_residual(h_glu, wd, x_attn)                        # (N, D) f32

    return out.reshape(B, S, D), None, None


# ------------------------- pure-JAX f32 reference ----------------------------
def _reference(x, params, cfg):
    B, S, D = x.shape
    H = cfg["num_attention_heads"]; Hkv = cfg["num_key_value_heads"]; hd = D // H
    eps = cfg["rms_norm_eps"]

    def rn(y, w):
        return y * jax.lax.rsqrt(jnp.mean(y * y, -1, keepdims=True) + eps) * w

    res = x
    h = rn(x, params["input_ln_w"])
    qkv = (h.reshape(B * S, D) @ params["wqkv"]).reshape(B, S, -1)
    q = qkv[..., : H * hd].reshape(B, S, H, hd)
    k = qkv[..., H * hd:(H + Hkv) * hd].reshape(B, S, Hkv, hd)
    v = qkv[..., (H + Hkv) * hd:].reshape(B, S, Hkv, hd)
    k = jnp.repeat(k, H // Hkv, 2); v = jnp.repeat(v, H // Hkv, 2)
    q, k, v = (t.transpose(0, 2, 1, 3) for t in (q, k, v))
    half = hd // 2
    inv_freq = 1.0 / (cfg["rope_theta"] ** (jnp.arange(half, dtype=jnp.float32) * 2.0 / hd))
    fr = jnp.outer(jnp.arange(S, dtype=jnp.float32), inv_freq)
    cos, sin = jnp.cos(fr), jnp.sin(fr)

    def rope(t):
        t1, t2 = t[..., :half], t[..., half:]
        return jnp.concatenate([t1 * cos - t2 * sin, t2 * cos + t1 * sin], -1)

    s = jnp.einsum("bhqd,bhkd->bhqk", rope(q), rope(k)) / math.sqrt(hd)
    mask = jnp.tril(jnp.ones((S, S), bool))
    s = jnp.where(mask, s, -jnp.inf)
    p = jax.nn.softmax(s, -1)
    o = jnp.einsum("bhqk,bhkd->bhqd", p, v).transpose(0, 2, 1, 3).reshape(B * S, D)
    x1 = res + (o @ params["wo"]).reshape(B, S, D)
    res = x1
    h2 = rn(x1, params["post_ln_w"]).reshape(B * S, D)
    g = h2 @ params["wg"]; u = h2 @ params["wu"]
    m = ((g * jax.nn.sigmoid(g)) * u) @ params["wd"]
    return res + m.reshape(B, S, D)


# ----------------------------------- main ------------------------------------
if __name__ == "__main__":
    cfg = dict(hidden_size=32, num_attention_heads=4, num_key_value_heads=2,
               intermediate_size=64, rope_theta=10000.0, rms_norm_eps=1e-5)
    B, S, D = 2, 8, cfg["hidden_size"]
    H, Hkv = cfg["num_attention_heads"], cfg["num_key_value_heads"]
    hd, I = D // H, cfg["intermediate_size"]

    key = jax.random.PRNGKey(0)
    k_x, k_qkv, k_o, k_g, k_u, k_d = jax.random.split(key, 6)
    scale = 0.05
    params = {
        "input_ln_w": jnp.ones((D,), jnp.float32),           # RMSNorm init = ones
        "post_ln_w": jnp.ones((D,), jnp.float32),
        "wqkv": scale * jax.random.normal(k_qkv, (D, (H + 2 * Hkv) * hd), jnp.float32),
        "wo": scale * jax.random.normal(k_o, (D, D), jnp.float32),
        "wg": scale * jax.random.normal(k_g, (D, I), jnp.float32),
        "wu": scale * jax.random.normal(k_u, (D, I), jnp.float32),
        "wd": scale * jax.random.normal(k_d, (I, D), jnp.float32),
    }
    x = jax.random.normal(k_x, (B, S, D), jnp.float32)

    out, _, _ = mha_decoder_layer(x, params, cfg)
    out = jax.block_until_ready(out)

    ref = _reference(x, params, cfg)
    assert out.shape == (B, S, D)
    # bf16 MXU operands + approx reciprocal -> loosened tolerance vs f32 reference
    assert jnp.allclose(out, ref, atol=2e-2, rtol=2e-2), "mismatch vs reference"
    print("KERNEL_OK")
</pallas_src>

<mosaic_0001>
module attributes {stable_mosaic.version = 11 : i64} {
  func.func @_norm_matmul_kernel(%arg0: i32, %arg1: i32, %arg2: memref<16x32xf32, #tpu.memory_space<vmem>>, %arg3: memref<1x32xf32, #tpu.memory_space<vmem>>, %arg4: memref<32x64xbf16, #tpu.memory_space<vmem>>, %arg5: memref<16x64xbf16, #tpu.memory_space<vmem>>) attributes {dimension_semantics = [#tpu.dimension_semantics<parallel>, #tpu.dimension_semantics<parallel>], iteration_bounds = array<i64: 1, 1>, scalar_prefetch = 0 : i64, scratch_operands = 0 : i64, tpu.core_type = #tpu.core_type<tc>, window_params = [{transform_indices = @transform_0, window_bounds = array<i64: 16, 32>}, {pipeline_mode = #tpu.pipeline_mode<synchronous>, transform_indices = @transform_1, window_bounds = array<i64: 1, 32>}, {transform_indices = @transform_2, window_bounds = array<i64: 32, 64>}, {transform_indices = @transform_3, window_bounds = array<i64: 16, 64>}]} {
    %c0 = arith.constant 0 : index
    %c0_0 = arith.constant 0 : index
    %0 = vector.load %arg2[%c0, %c0_0] : memref<16x32xf32, #tpu.memory_space<vmem>>, vector<16x32xf32>
    %1 = arith.mulf %0, %0 : vector<16x32xf32>
    %cst = arith.constant dense<0.000000e+00> : vector<16xf32>
    %2 = vector.multi_reduction <add>, %1, %cst [1] : vector<16x32xf32> to vector<16xf32>
    %3 = vector.shape_cast %2 : vector<16xf32> to vector<16x1xf32>
    %cst_1 = arith.constant 3.200000e+01 : f32
    %4 = vector.broadcast %cst_1 : f32 to vector<16x1xf32>
    %5 = arith.divf %3, %4 : vector<16x1xf32>
    %cst_2 = arith.constant 9.99999974E-6 : f32
    %6 = vector.broadcast %cst_2 : f32 to vector<16x1xf32>
    %7 = arith.addf %5, %6 : vector<16x1xf32>
    %8 = math.rsqrt %7 : vector<16x1xf32>
    %9 = vector.broadcast %8 : vector<16x1xf32> to vector<16x32xf32>
    %10 = arith.mulf %0, %9 : vector<16x32xf32>
    %c0_3 = arith.constant 0 : index
    %c0_4 = arith.constant 0 : index
    %11 = vector.load %arg3[%c0_3, %c0_4] : memref<1x32xf32, #tpu.memory_space<vmem>>, vector<1x32xf32>
    %12 = vector.broadcast %11 : vector<1x32xf32> to vector<16x32xf32>
    %13 = arith.mulf %10, %12 : vector<16x32xf32>
    %14 = arith.truncf %13 : vector<16x32xf32> to vector<16x32xbf16>
    %c0_5 = arith.constant 0 : index
    %c0_6 = arith.constant 0 : index
    %15 = vector.load %arg4[%c0_5, %c0_6] : memref<32x64xbf16, #tpu.memory_space<vmem>>, vector<32x64xbf16>
    %cst_7 = arith.constant dense<0.000000e+00> : vector<16x64xf32>
    %16 = tpu.matmul %14, %15, %cst_7 {dimension_numbers = #tpu.dot_dimension_numbers<[1], [0], [0], [1], [0, 0, 1, 1], [], []>} : vector<16x32xbf16>, vector<32x64xbf16>, vector<16x64xf32> -> vector<16x64xf32>
    %17 = arith.truncf %16 : vector<16x64xf32> to vector<16x64xbf16>
    %c0_8 = arith.constant 0 : index
    %c0_9 = arith.constant 0 : index
    %18 = vector.load %arg5[%c0_8, %c0_9] : memref<16x64xbf16, #tpu.memory_space<vmem>>, vector<16x64xbf16>
    tpu.vector_store %arg5[%c0_8, %c0_9], %17 {strides = array<i32>} : memref<16x64xbf16, #tpu.memory_space<vmem>>, vector<16x64xbf16>,
    return
  }
  func.func @transform_0(%arg0: i32, %arg1: i32) -> (i32, i32) {
    %c0_i32 = arith.constant 0 : i32
    %c0_i32_0 = arith.constant 0 : i32
    return %arg0, %c0_i32 : i32, i32
  }
  func.func @transform_1(%arg0: i32, %arg1: i32) -> (i32, i32) {
    %c0_i32 = arith.constant 0 : i32
    %c0_i32_0 = arith.constant 0 : i32
    %c0_i32_1 = arith.constant 0 : i32
    return %c0_i32, %c0_i32_0 : i32, i32
  }
  func.func @transform_2(%arg0: i32, %arg1: i32) -> (i32, i32) {
    %c0_i32 = arith.constant 0 : i32
    %c0_i32_0 = arith.constant 0 : i32
    return %c0_i32, %arg1 : i32, i32
  }
  func.func @transform_3(%arg0: i32, %arg1: i32) -> (i32, i32) {
    %c0_i32 = arith.constant 0 : i32
    return %arg0, %arg1 : i32, i32
  }
}

</mosaic_0001>

<bundles_post_ra>
// kernel: tpu_custom_call.1
= control target key start
LH: loop header
LB: loop body
LE: loop exit
PB: predicated region body
PF: predicated region fallthrough
CT: control target
= control target key end

     0   :  { %8 = vsyncpa [#allocation3], 0  ;;  %s346_s0 = inlined_call_operand.hbm [shape: f32[16,32], index: 0, kind: input, shape index: {}]   ;;  %s347_s1 = inlined_call_operand.vmem [shape: f32[1,32], index: 1, kind: input, shape index: {}]   ;;  %s348_s2 = inlined_call_operand.hbm [shape: bf16[32,64], index: 2, kind: input, shape index: {}]   ;;  %s349_s3 = inlined_call_operand.hbm [shape: bf16[16,64], index: 3, kind: output, shape index: {}]  }
   0x1   :  { %9 = vsyncpa [#allocation6], 0 }
   0x2   :  { %10 = vsyncpa [#allocation4], 0  ;;  %s269_s12 = smov [#allocation2]   ;;  %s197_s16 = scalar_lea.hbm %s346_s0, 256 }
   0x3   :  { %s16_s13 = sshll.u32 %s269_s12, 4  ;;  %p198_p0 = scmp.ne.s32.totalorder %s346_s0, %s197_s16  ;;  %s17_s13 = int_to_ptr.vmem [resolvable:$true] %s16_s13 }
   0x4   :  { %p201_p1 = scmp.lt.u32.totalorder %s197_s16, %s346_s0 }
   0x6   :  { %p203_p2 = pnand %p201_p1, %p198_p0 }
   0x8   :  { %206 = shalt.err (!%p203_p2)
}
   0x9   :  { %s207_s21 = scalar_lea.vmem %s17_s13, 256  ;;  %p212_p4 = scmp.lt.s32.totalorder %s17_s13, %s17_s13 }
   0xa   :  { %p208_p3 = scmp.ne.s32.totalorder %s17_s13, %s207_s21  ;;  %p213_p5 = scmp.lt.s32.totalorder %s207_s21, %s207_s21 }
   0xc   :  { %p214_p6 = por %p213_p5, %p212_p4 }
   0xe   :  { %p215_p7 = pnand %p214_p6, %p208_p3 }
  0x10   :  { %218 = shalt.err (!%p215_p7)
}
  0x11   :  { %s270_s22 = smov 128   ;;  %s271_s23 = smov 8  }
  0x12   :  { %22 = dma.hbm_to_vmem [thread:$0]  %s346_s0, 256, %s17_s13, [#allocation3], %s270_s22, %s270_s22, %s271_s23  }
  0x13   :  { %s272_s26 = smov [#allocation5]   ;;  %s219_s30 = scalar_lea.hbm %s348_s2, 256 }
  0x14   :  { %s30_s27 = sshll.u32 %s272_s26, 4  ;;  %p220_p8 = scmp.ne.s32.totalorder %s348_s2, %s219_s30  ;;  %s31_s27 = int_to_ptr.vmem [resolvable:$true] %s30_s27 }
  0x15   :  { %p223_p9 = scmp.lt.u32.totalorder %s219_s30, %s348_s2 }
  0x17   :  { %p225_p10 = pnand %p223_p9, %p220_p8 }
  0x19   :  { %228 = shalt.err (!%p225_p10)
}
  0x1a   :  { %s229_s8 = scalar_lea.vmem %s31_s27, 256  ;;  %p234_p12 = scmp.lt.s32.totalorder %s31_s27, %s31_s27 }
  0x1b   :  { %p230_p11 = scmp.ne.s32.totalorder %s31_s27, %s229_s8  ;;  %p235_p13 = scmp.lt.s32.totalorder %s229_s8, %s229_s8 }
  0x1d   :  { %p236_p0 = por %p235_p13, %p234_p12 }
  0x1f   :  { %p237_p1 = pnand %p236_p0, %p230_p11 }
  0x21   :  { %240 = shalt.err (!%p237_p1)
}
  0x22   :  { %s273_s0 = smov 64   ;;  %s274_s9 = smov 4  }
  0x23   :  { %36 = dma.hbm_to_vmem [thread:$0]  %s348_s2, 256, %s31_s27, [#allocation6], %s273_s0, %s273_s0, %s274_s9  }
  0x24   :  { %263 = dma.done.wait [#allocation3], 256  }
  0x25   :  { %264 = vsyncadd [#allocation3], 4294967040 }
  0x26   :  { %265 = dma.done.wait [#allocation6], 256  }
  0x27   :  { %266 = vsyncadd [#allocation6], 4294967040  ;;  %v44_v0 = vld [vmem:[#allocation2] sm:$0xff]  ;;  %vm48_vm0 = vcmask 261120   ;;  %v45_v1 = vld [vmem:[#allocation2 + $0x8] sm:$0xff]  ;;  %v275_v7 = vmov 0.0  }
  0x28   :  { %v46_v2 = vmul.f32 %v44_v0, %v44_v0  ;;  %v47_v3 = vmul.f32 %v45_v1, %v45_v1  ;;  %v191_v6 = vld [vmem:[#allocation5] sm:$0xff]   ;;  %174 = vmatprep.subr.bf16.mxu0 %v275_v7  ;;  %vm276_vm1 = vmmov 0   ;;  %v192_v8 = vld [vmem:[#allocation5 + $0x8] sm:$0xff]   ;;  %v163_v18 = vld [vmem:[%s347_s1] ss:$0 sm:$0xff]  ;;  %vm142_vm2 = vcmask 519168  }
  0x29   :  { %178 = vmatprep.mubr.msk.bf16.mxu0 %vm276_vm1, %v275_v7  ;;  %175 = vmatpush3.bf16.msra.mxu0 %v191_v6  ;;  %s277_s13 = smov [#allocation7]  }
  0x2a   :  { %v49_v4 = vsel %vm48_vm0, %v46_v2, 0.0  ;;  %v52_v5 = vsel %vm48_vm0, %v47_v3, 0.0  ;;  %176 = vmatprep.subr.bf16.mxu0 %v275_v7  ;;  %s150_s14 = sshll.u32 %s277_s13, 4  ;;  %s151_s14 = int_to_ptr.vmem [resolvable:$true] %s150_s14 }
  0x2b   :  { %50 = vadd.xlane.f32.xlu0 %v49_v4  ;;  %s241_s15 = scalar_lea.vmem %s151_s14, 128  ;;  %p246_p3 = scmp.lt.s32.totalorder %s151_s14, %s151_s14 }
  0x2c   :  { %p242_p2 = scmp.ne.s32.totalorder %s151_s14, %s241_s15  ;;  %p247_p4 = scmp.lt.s32.totalorder %s241_s15, %s241_s15 }
  0x2d   :  { %177 = vmatpush3.bf16.msra.mxu0 %v192_v8 }
  0x2e   :  { %p248_p5 = por %p247_p4, %p246_p3 }
  0x2f   :  { %53 = vadd.xlane.f32.xlu0 %v52_v5 }
  0x30   :  { %p249_p6 = pnand %p248_p5, %p242_p2 }
  0xb8   :  { %v51_v9 = vpop.xlane.xlu0 %50 }
  0xb9   :  { %v56_v10 = vmul.f32 0.03125, %v51_v9 }
  0xbb   :  { %v58_v11 = vadd.f32 1e-05, %v56_v10 }
  0xbc   :  { %v54_v12 = vpop.xlane.xlu0 %53 }
  0xbd   :  { %193 = vrsqrt.f32 %v58_v11  ;;  %v57_v13 = vmul.f32 0.03125, %v54_v12 }
  0xbf   :  { %v59_v14 = vadd.f32 1e-05, %v57_v13 }
  0xc1   :  { %195 = vrsqrt.f32 %v59_v14 }
  0xc7   :  { %v194_v15 = vpop.eup %193 }
  0xc8   :  { %v62_v16 = vmul.f32 %v194_v15, %v44_v0 }
  0xca   :  { %v71_v20 = vmul.f32 %v163_v18, %v62_v16 }
  0xcb   :  { %v196_v17 = vpop.eup %195 }
  0xcc   :  { %v63_v19 = vmul.f32 %v196_v17, %v45_v1 }
  0xce   :  { %v72_v21 = vmul.f32 %v163_v18, %v63_v19 }
  0xd0   :  { %v73_v22 = vpack.c.bf16 %v72_v21, %v71_v20 }
  0xd2   :  { %179 = vmatmul.mubr.msk.bf16.vlgmr.msra.gmra.mrb[0].mxu0 %vm48_vm0, %v73_v22 }
 0x1a5   :  { %v127_v23 = vpop.f32.mrb[0].mxu0 }
 0x1a6   :  { %v169_v24 = vpack.c.bf16 %v127_v23, %v127_v23  ;;  %v180_v25 = vpop.f32.mrb[1].mxu0 }
 0x1a7   :  { %v130_v26 = vpop.f32.mrb[2].mxu0 }
 0x1a8   :  { %v170_v27 = vpack.c.bf16 %v130_v26, %v130_v26  ;;  %v181_v28 = vpop.f32.mrb[3].mxu0  ;;  %143 = vst.msk [vmem:[#allocation7] sm:$0xf] %vm142_vm2, %v169_v24 }
 0x1aa   :  { %144 = vst.msk [vmem:[#allocation7 + $0x4] sm:$0xf] %vm142_vm2, %v170_v27 }
 0x1ab   :  { %252 = shalt.err (!%p249_p6)
}
 0x1ac   :  { %s253_s17 = scalar_lea.hbm %s349_s3, 128 }
 0x1ad   :  { %p254_p7 = scmp.ne.s32.totalorder %s349_s3, %s253_s17  ;;  %p257_p8 = scmp.lt.u32.totalorder %s253_s17, %s349_s3 }
 0x1af   :  { %p259_p9 = pnand %p257_p8, %p254_p7 }
 0x1b1   :  { %262 = shalt.err (!%p259_p9)
}
 0x1b2   :  { %156 = dma.vmem_to_hbm [thread:$0]  %s151_s14, 128, %s349_s3, [#allocation4], %s273_s0, %s273_s0, %s274_s9  }
 0x1b3   :  { %267 = dma.done.wait [#allocation4], 128  }
 0x1b4   :  { %268 = vsyncadd [#allocation4], 4294967168 }
 0x1b5   :  { %160 = vsyncpa [#allocation3], 1 }
 0x1b6   :  { %161 = vsyncpa [#allocation6], 1 }
 0x1b7   :  { %162 = vsyncpa [#allocation4], 1 }

</bundles_post_ra>
